<compile_context>
chip_gen: v5e
topology: v5e:2x2
jax: 0.10.0
libtpu: 0.0.40
codegen_flags: <defaults>
</compile_context>

<pallas_src>
import jax
import jax.numpy as jnp
from jax.experimental import pallas as pl
from jax.experimental.pallas import tpu as pltpu


def _linear_kernel(x_ref, w_ref, b_ref, o_ref, acc_ref):
    # x_ref: (tm, tk), w_ref: (tk, tn), b_ref: (1, tn) f32, o_ref: (tm, tn)
    k = pl.program_id(2)

    @pl.when(k == 0)
    def _init():
        acc_ref[...] = jnp.zeros_like(acc_ref)

    acc_ref[...] += jnp.dot(x_ref[...], w_ref[...],
                            preferred_element_type=jnp.float32)

    @pl.when(k == pl.num_programs(2) - 1)
    def _finalize():
        # Bias is already f32; add it once, then cast/store.
        o_ref[...] = (acc_ref[...] + b_ref[...]).astype(o_ref.dtype)


def _round_up(x, m):
    return (x + m - 1) // m * m


def _pick_tile_n(n_padded):
    # n_padded is always a multiple of 128.
    for cand in (512, 256, 128):
        if n_padded % cand == 0:
            return cand
    return n_padded


def _pick_tile_k(k_dim, cap=512):
    if k_dim <= cap:
        return k_dim
    for cand in (512, 384, 256, 128):
        if k_dim % cand == 0:
            return cand
    # No aligned divisor: keep full K resident (last dim == full array dim
    # is always a legal block shape).
    return k_dim


def linear_custom(inputs, weights, biases, *, tm=256):
    """Pallas equivalent of LinearCustom.forward(inputs, [weights, biases])."""
    in_channels, out_channels = weights.shape
    assert biases.shape == (out_channels,)
    assert inputs.shape[-1] == in_channels

    lead_shape = inputs.shape[:-1]
    x2d = inputs.reshape(-1, in_channels)
    M, K = x2d.shape
    N = out_channels
    out_dtype = jnp.result_type(inputs.dtype, weights.dtype)

    # --- Lane-dense output: pad N (weights + bias) to a multiple of 128. ---
    Np = _round_up(N, 128)
    if Np != N:
        weights = jnp.pad(weights, ((0, 0), (0, Np - N)))
        biases = jnp.pad(biases, (0, Np - N))
    b2d = biases.astype(jnp.float32).reshape(1, Np)

    # --- Tile sizes (MXU-sized, VMEM-bounded). ---
    tm_eff = M if M <= tm else tm            # tm is a multiple of 8; small M uses full dim
    tn = _pick_tile_n(Np)
    tk = _pick_tile_k(K)

    grid = (pl.cdiv(M, tm_eff), Np // tn, pl.cdiv(K, tk))

    # --- VMEM budget: double-buffered tiles + accumulator, with headroom. ---
    in_bytes = jnp.dtype(inputs.dtype).itemsize
    w_bytes = jnp.dtype(weights.dtype).itemsize
    o_bytes = jnp.dtype(out_dtype).itemsize
    est = 2 * (tm_eff * tk * in_bytes + tk * tn * w_bytes + tn * 4
               + tm_eff * tn * o_bytes) + tm_eff * tn * 4
    vmem_limit = int(min(max(2 * est, 32 << 20), 64 << 20))

    out = pl.pallas_call(
        _linear_kernel,
        out_shape=jax.ShapeDtypeStruct((M, Np), out_dtype),
        grid_spec=pltpu.PrefetchScalarGridSpec(
            num_scalar_prefetch=0,
            grid=grid,
            in_specs=[
                pl.BlockSpec((tm_eff, tk), lambda i, j, k: (i, k)),  # x tile
                pl.BlockSpec((tk, tn), lambda i, j, k: (k, j)),      # weight tile
                pl.BlockSpec((1, tn), lambda i, j, k: (0, j)),       # bias tile (f32)
            ],
            out_specs=pl.BlockSpec((tm_eff, tn), lambda i, j, k: (i, j)),
            scratch_shapes=[pltpu.VMEM((tm_eff, tn), jnp.float32)],
        ),
        compiler_params=pltpu.CompilerParams(
            dimension_semantics=("parallel", "parallel", "arbitrary"),
            vmem_limit_bytes=vmem_limit,
        ),
    )(x2d, weights, b2d)

    if Np != N:
        out = out[:, :N]
    return out.reshape(*lead_shape, N)


if __name__ == "__main__":
    key = jax.random.PRNGKey(0)
    k_x, k_w, k_b = jax.random.split(key, 3)

    batch, seq, in_channels, out_channels = 2, 8, 32, 64

    # Deterministic synthetic inputs / parameters
    # (shapes per LinearCustom.__init__/forward).
    x = jax.random.normal(k_x, (batch, seq, in_channels), dtype=jnp.float32)
    weights = jax.random.normal(k_w, (in_channels, out_channels), dtype=jnp.float32) * 0.05
    biases = jax.random.normal(k_b, (out_channels,), dtype=jnp.float32) * 0.1

    y = linear_custom(x, weights, biases)
    y = jax.block_until_ready(y)

    # Reference check against plain JAX (same semantics as torch.matmul + bias).
    y_ref = jnp.matmul(x, weights) + biases
    assert y.shape == y_ref.shape == (batch, seq, out_channels)
    assert jnp.allclose(y, y_ref, atol=1e-5, rtol=1e-5)

    print("KERNEL_OK")
</pallas_src>

<mosaic_0001>
module attributes {stable_mosaic.version = 11 : i64} {
  func.func @_linear_kernel(%arg0: i32, %arg1: i32, %arg2: i32, %arg3: memref<16x32xf32, #tpu.memory_space<vmem>>, %arg4: memref<32x128xf32, #tpu.memory_space<vmem>>, %arg5: memref<1x128xf32, #tpu.memory_space<vmem>>, %arg6: memref<16x128xf32, #tpu.memory_space<vmem>>, %arg7: memref<16x128xf32, #tpu.memory_space<vmem>>) attributes {dimension_semantics = [#tpu.dimension_semantics<parallel>, #tpu.dimension_semantics<parallel>, #tpu.dimension_semantics<arbitrary>], iteration_bounds = array<i64: 1, 1, 1>, scalar_prefetch = 0 : i64, scratch_operands = 1 : i64, tpu.core_type = #tpu.core_type<tc>, window_params = [{transform_indices = @transform_0, window_bounds = array<i64: 16, 32>}, {transform_indices = @transform_1, window_bounds = array<i64: 32, 128>}, {transform_indices = @transform_2, window_bounds = array<i64: 1, 128>}, {transform_indices = @transform_3, window_bounds = array<i64: 16, 128>}]} {
    %c0_i32 = arith.constant 0 : i32
    %0 = arith.cmpi eq, %arg2, %c0_i32 : i32
    %1 = arith.extui %0 : i1 to i32
    %c0_i32_0 = arith.constant 0 : i32
    %2 = arith.cmpi ne, %1, %c0_i32_0 : i32
    scf.if %2 {
      %cst_10 = arith.constant 0.000000e+00 : f32
      %12 = vector.broadcast %cst_10 : f32 to vector<16x128xf32>
      %c0_11 = arith.constant 0 : index
      %c0_12 = arith.constant 0 : index
      %13 = vector.load %arg7[%c0_11, %c0_12] : memref<16x128xf32, #tpu.memory_space<vmem>>, vector<16x128xf32>
      tpu.vector_store %arg7[%c0_11, %c0_12], %12 {strides = array<i32>} : memref<16x128xf32, #tpu.memory_space<vmem>>, vector<16x128xf32>,
    } else {
    }
    %c0 = arith.constant 0 : index
    %c0_1 = arith.constant 0 : index
    %3 = vector.load %arg7[%c0, %c0_1] : memref<16x128xf32, #tpu.memory_space<vmem>>, vector<16x128xf32>
    %c0_2 = arith.constant 0 : index
    %c0_3 = arith.constant 0 : index
    %4 = vector.load %arg3[%c0_2, %c0_3] : memref<16x32xf32, #tpu.memory_space<vmem>>, vector<16x32xf32>
    %c0_4 = arith.constant 0 : index
    %c0_5 = arith.constant 0 : index
    %5 = vector.load %arg4[%c0_4, %c0_5] : memref<32x128xf32, #tpu.memory_space<vmem>>, vector<32x128xf32>
    %cst = arith.constant dense<0.000000e+00> : vector<16x128xf32>
    %6 = tpu.matmul %4, %5, %cst {dimension_numbers = #tpu.dot_dimension_numbers<[1], [0], [0], [1], [0, 0, 1, 1], [], []>} : vector<16x32xf32>, vector<32x128xf32>, vector<16x128xf32> -> vector<16x128xf32>
    %7 = arith.addf %3, %6 : vector<16x128xf32>
    %c0_6 = arith.constant 0 : index
    %c0_7 = arith.constant 0 : index
    %8 = vector.load %arg7[%c0_6, %c0_7] : memref<16x128xf32, #tpu.memory_space<vmem>>, vector<16x128xf32>
    tpu.vector_store %arg7[%c0_6, %c0_7], %7 {strides = array<i32>} : memref<16x128xf32, #tpu.memory_space<vmem>>, vector<16x128xf32>,
    %c0_i32_8 = arith.constant 0 : i32
    %9 = arith.cmpi eq, %arg2, %c0_i32_8 : i32
    %10 = arith.extui %9 : i1 to i32
    %c0_i32_9 = arith.constant 0 : i32
    %11 = arith.cmpi ne, %10, %c0_i32_9 : i32
    scf.if %11 {
      %c0_10 = arith.constant 0 : index
      %c0_11 = arith.constant 0 : index
      %12 = vector.load %arg7[%c0_10, %c0_11] : memref<16x128xf32, #tpu.memory_space<vmem>>, vector<16x128xf32>
      %c0_12 = arith.constant 0 : index
      %c0_13 = arith.constant 0 : index
      %13 = vector.load %arg5[%c0_12, %c0_13] : memref<1x128xf32, #tpu.memory_space<vmem>>, vector<1x128xf32>
      %14 = vector.broadcast %13 : vector<1x128xf32> to vector<16x128xf32>
      %15 = arith.addf %12, %14 : vector<16x128xf32>
      %c0_14 = arith.constant 0 : index
      %c0_15 = arith.constant 0 : index
      %16 = vector.load %arg6[%c0_14, %c0_15] : memref<16x128xf32, #tpu.memory_space<vmem>>, vector<16x128xf32>
      tpu.vector_store %arg6[%c0_14, %c0_15], %15 {strides = array<i32>} : memref<16x128xf32, #tpu.memory_space<vmem>>, vector<16x128xf32>,
    } else {
    }
    return
  }
  func.func @transform_0(%arg0: i32, %arg1: i32, %arg2: i32) -> (i32, i32) {
    %c0_i32 = arith.constant 0 : i32
    return %arg0, %arg2 : i32, i32
  }
  func.func @transform_1(%arg0: i32, %arg1: i32, %arg2: i32) -> (i32, i32) {
    %c0_i32 = arith.constant 0 : i32
    return %arg2, %arg1 : i32, i32
  }
  func.func @transform_2(%arg0: i32, %arg1: i32, %arg2: i32) -> (i32, i32) {
    %c0_i32 = arith.constant 0 : i32
    %c0_i32_0 = arith.constant 0 : i32
    return %c0_i32, %arg1 : i32, i32
  }
  func.func @transform_3(%arg0: i32, %arg1: i32, %arg2: i32) -> (i32, i32) {
    %c0_i32 = arith.constant 0 : i32
    return %arg0, %arg1 : i32, i32
  }
}

</mosaic_0001>

<bundles_post_ra>
// kernel: tpu_custom_call.1
= control target key start
LH: loop header
LB: loop body
LE: loop exit
PB: predicated region body
PF: predicated region fallthrough
CT: control target
= control target key end

     0   :  { %8 = vsyncpa [#allocation4], 0  ;;  %s264_s0 = inlined_call_operand.hbm [shape: f32[16,32], index: 0, kind: input, shape index: {}]   ;;  %s265_s1 = inlined_call_operand.hbm [shape: f32[32,128], index: 1, kind: input, shape index: {}]   ;;  %s266_s2 = inlined_call_operand.vmem [shape: f32[1,128], index: 2, kind: input, shape index: {}]   ;;  %s267_s3 = inlined_call_operand.hbm [shape: f32[16,128], index: 3, kind: output, shape index: {}]  }
   0x1   :  { %9 = vsyncpa [#allocation7], 0 }
   0x2   :  { %10 = vsyncpa [#allocation5], 0  ;;  %s15_s14 = sshll.u32 %s264_s0, 4  ;;  %s218_s15 = smov [#allocation3]   ;;  %s16_s14 = int_to_ptr.hbm [resolvable:$true] %s15_s14 }
   0x3   :  { %s17_s16 = sshll.u32 %s218_s15, 4  ;;  %s28_s19 = sshll.u32 %s265_s1, 4  ;;  %s18_s16 = int_to_ptr.vmem [resolvable:$true] %s17_s16  ;;  %s29_s19 = int_to_ptr.hbm [resolvable:$true] %s28_s19 }
   0x4   :  { %s219_s20 = smov 128   ;;  %s220_s21 = smov 8  }
   0x5   :  { %23 = dma.hbm_to_vmem [thread:$0]  %s16_s14, 256, %s18_s16, [#allocation4], %s219_s20, %s219_s20, %s220_s21  }
   0x6   :  { %s221_s22 = smov [#allocation6]  }
   0x7   :  { %s30_s23 = sshll.u32 %s221_s22, 4  ;;  %s31_s23 = int_to_ptr.vmem [resolvable:$true] %s30_s23 }
   0x8   :  { %36 = dma.hbm_to_vmem [thread:$0]  %s29_s19, 512, %s31_s23, [#allocation7], %s219_s20, %s219_s20, %s220_s21  }
   0x9   :  { %212 = dma.done.wait [#allocation4], 256  }
   0xa   :  { %213 = vsyncadd [#allocation4], 4294967040 }
   0xb   :  { %214 = dma.done.wait [#allocation7], 512  }
   0xc   :  { %215 = vsyncadd [#allocation7], 4294966784  ;;  %v60_v0 = vld [vmem:[#allocation6 + $0x18] sm:$0xff]  ;;  %v59_v1 = vld [vmem:[#allocation6 + $0x10] sm:$0xff]  ;;  %vm61_vm0 = vcmask 261120   ;;  %s222_s24 = smov [#allocation8]  }
   0xd   :  { %80 = vmatpush.msra.mxu0 %v60_v0  ;;  %130 = vmatpush.msra.mxu1 %v60_v0  ;;  %v58_v2 = vld [vmem:[#allocation6 + $0x8] sm:$0xff]  ;;  %v57_v3 = vld [vmem:[#allocation6] sm:$0xff]  ;;  %v55_v4 = vld [vmem:[#allocation3] sm:$0xff]  ;;  %s112_s25 = sshll.u32 %s222_s24, 4  ;;  %s114_s28 = sshll.u32 %s267_s3, 4  ;;  %s113_s25 = int_to_ptr.vmem [resolvable:$true] %s112_s25  ;;  %s115_s28 = int_to_ptr.hbm [resolvable:$true] %s114_s28 }
   0xe   :  { %v56_v5 = vld [vmem:[#allocation3 + $0x8] sm:$0xff]  ;;  %v139_v6 = vld [vmem:[%s266_s2] ss:$0 sm:$0xff] }
   0xf   :  { %81 = vmatpush.msra.mxu0 %v59_v1  ;;  %131 = vmatpush.msra.mxu1 %v59_v1 }
  0x11   :  { %82 = vmatpush.msra.mxu0 %v58_v2  ;;  %132 = vmatpush.msra.mxu1 %v58_v2 }
  0x13   :  { %83 = vmatpush.msra.mxu0 %v57_v3  ;;  %133 = vmatpush.msra.mxu1 %v57_v3 }
  0x14   :  { %128 = vmatmul.msk.f32.vlgmr.msra.gmra.mxu0 %vm61_vm0, %v55_v4  ;;  %129 = vmatmul.msk.f32.vlgmr.msra.gmra.mxu1 %vm61_vm0, %v56_v5 }
  0x91   :  { %v85_v7 = vpop.f32.mrf.mxu0  ;;  %v88_v8 = vpop.f32.mrf.mxu1 }
  0x92   :  { %v104_v9 = vadd.f32 %v139_v6, %v85_v7  ;;  %v105_v10 = vadd.f32 %v139_v6, %v88_v8 }
  0x94   :  { %106 = vst [vmem:[#allocation8] sm:$0xff] %v104_v9 }
  0x95   :  { %107 = vst [vmem:[#allocation8 + $0x8] sm:$0xff] %v105_v10 }
  0x96   :  { %120 = dma.vmem_to_hbm [thread:$0]  %s113_s25, 256, %s115_s28, [#allocation5], %s219_s20, %s219_s20, %s220_s21  }
  0x97   :  { %216 = dma.done.wait [#allocation5], 256  }
  0x98   :  { %217 = vsyncadd [#allocation5], 4294967040 }
  0x99   :  { %125 = vsyncpa [#allocation4], 1 }
  0x9a   :  { %126 = vsyncpa [#allocation7], 1 }
  0x9b   :  { %127 = vsyncpa [#allocation5], 1 }

</bundles_post_ra>
